<compile_context>
chip_gen: v7x
topology: tpu7x:2x2x1
jax: 0.10.0
libtpu: 0.0.40
codegen_flags: <defaults>
</compile_context>

<pallas_src>
import functools

import jax
import jax.numpy as jnp
from jax.experimental import pallas as pl
from jax.experimental.pallas import tpu as pltpu


def _mha_kernel(x_ref, bias_ref, wqkv_ref, bqkv_ref, wo_ref, bo_ref,
                o_ref, ctx_ref, *, bb, seq_len, hidden, head_dim, num_heads):
    """One batch-block grid step of the fused MHA forward (all heads)."""
    rows = bb * seq_len

    x2d = x_ref[...].reshape(rows, hidden)            # bf16 activations
    cdt = x2d.dtype
    bias = bias_ref[...]                              # [bb, 1, L] f32, broadcast over queries

    # ---- fused Q|K|V projection for ALL heads: one [rows, H] @ [H, 3H] matmul ----
    # column layout: [ q (H cols, pre-scaled) | k (H cols) | v (H cols) ]
    qkv = jnp.dot(x2d, wqkv_ref[...], preferred_element_type=jnp.float32)
    qkv = qkv + bqkv_ref[...]                         # [rows, 3H] f32

    # ---- per-head scaled dot-product attention (weights stay resident) ----
    for h in range(num_heads):                        # static head loop -> static lane slices
        lo = h * head_dim
        q = qkv[:, lo:lo + head_dim].astype(cdt).reshape(bb, seq_len, head_dim)
        k = qkv[:, hidden + lo:hidden + lo + head_dim].astype(cdt).reshape(
            bb, seq_len, head_dim)
        v = qkv[:, 2 * hidden + lo:2 * hidden + lo + head_dim].astype(cdt).reshape(
            bb, seq_len, head_dim)

        logits = jax.lax.dot_general(q, k, (((2,), (2,)), ((0,), (0,))),
                                     preferred_element_type=jnp.float32)  # [bb, L, L]
        logits = logits + bias

        m = jnp.max(logits, axis=-1, keepdims=True)
        p = jnp.exp(logits - m)
        s = jnp.sum(p, axis=-1, keepdims=True)
        ctx = jax.lax.dot_general(p.astype(cdt), v, (((2,), (1,)), ((0,), (0,))),
                                  preferred_element_type=jnp.float32)     # [bb, L, dh]
        # normalization deferred until after the PV matmul; approx recip on the EUP
        ctx = ctx * pl.reciprocal(s, approx=True)

        # head h's lane slice of the combined-heads context (combine_heads layout)
        ctx_ref[:, lo:lo + head_dim] = ctx.reshape(rows, head_dim).astype(ctx_ref.dtype)

    # ---- single full-depth output projection: [rows, H] @ [H, H] ----
    out = jnp.dot(ctx_ref[...], wo_ref[...], preferred_element_type=jnp.float32)
    out = out + bo_ref[...]
    o_ref[...] = out.reshape(bb, seq_len, hidden).astype(o_ref.dtype)


def _device_vmem_bytes():
    """Physical VMEM per TensorCore; conservative fallback if the query fails."""
    try:
        info = pltpu.get_tpu_info()
        cap = getattr(info, "vmem_capacity_bytes", None)
        if cap:
            return int(cap)
    except Exception:
        pass
    return 64 * 1024 * 1024   # v7x per-TC size; safe lower bound for v5e/v6e too


def _choose_bb(B, L, H, out_itemsize, vmem_budget):
    """Pick batch elements per grid step: large rows/step, VMEM- and megacore-aware."""
    target_rows = 1024
    bb = max(1, min(B, target_rows // max(L, 1)))
    while B % bb:
        bb -= 1

    def fits(n):
        rows = n * L
        x_blk = 2 * rows * H * 2                  # input block, bf16, double-buffered
        o_blk = 2 * rows * H * out_itemsize       # output block, double-buffered
        qkv = rows * 3 * H * 4                    # fused projection result, f32
        attn = 2 * n * L * L * 4                  # logits + exp temporaries, f32
        ctx = rows * H * 2                        # context scratch, bf16
        w = 2 * (3 * H * H + H * H) * 2           # resident weights, bf16, double-buffered
        return x_blk + o_blk + qkv + attn + ctx + w <= vmem_budget

    while bb > 1 and not fits(bb):
        bb -= 1
        while B % bb:
            bb -= 1

    # keep at least 2 batch blocks so both v7x TensorCores get work
    if bb > 1 and B // bb < 2:
        bb = max(1, B // 2)
        while B % bb:
            bb -= 1
    return bb


def multihead_attention(query, bias, params, *, num_heads,
                        compute_dtype=jnp.bfloat16, out_dtype=None):
    """query: [B, L, H]; bias: [B, 1, 1, L] additive mask (e.g. 0 / -1e9) or None.

    Self-attention path of thumt MultiHeadAttention.forward (memory=None, kv=None).
    """
    B, L, H = query.shape
    if H % num_heads:
        raise ValueError("hidden_size must be divisible by num_heads")
    dh = H // num_heads
    out_dtype = query.dtype if out_dtype is None else out_dtype

    wq, bq, wk, bk, wv, bv, wo, bo = params
    scale = float(dh) ** -0.5

    # fused q|k|v weights; 1/sqrt(dh) folded into the q weight & bias
    wqkv = jnp.concatenate([wq * scale, wk, wv], axis=-1).astype(compute_dtype)  # [H, 3H]
    bqkv = jnp.concatenate([bq * scale, bk, bv]).reshape(1, 3 * H).astype(jnp.float32)
    wo_c = wo.astype(compute_dtype)                                              # [H, H]
    bo2 = bo.reshape(1, H).astype(jnp.float32)

    if bias is None:
        bias3 = jnp.zeros((B, 1, L), jnp.float32)
    else:
        if bias.shape != (B, 1, 1, L):
            raise ValueError("bias must be [batch, 1, 1, length]; masks that vary "
                             "along the query axis are not supported by this wrapper")
        bias3 = bias.reshape(B, 1, L).astype(jnp.float32)

    x = query.astype(compute_dtype)

    # generation-aware VMEM scoped limit: ~48 MiB on v7x, ~96 MiB on v5e/v6e
    vmem_cap = _device_vmem_bytes()
    vmem_limit = min(max(32 * 1024 * 1024, int(vmem_cap * 0.75)), 100 * 1024 * 1024)

    out_itemsize = jnp.dtype(out_dtype).itemsize
    bb = _choose_bb(B, L, H, out_itemsize, int(vmem_limit * 0.7))
    num_b_blocks = B // bb

    kernel = functools.partial(_mha_kernel, bb=bb, seq_len=L, hidden=H,
                               head_dim=dh, num_heads=num_heads)

    return pl.pallas_call(
        kernel,
        out_shape=jax.ShapeDtypeStruct((B, L, H), out_dtype),
        grid_spec=pltpu.PrefetchScalarGridSpec(
            num_scalar_prefetch=0,
            grid=(num_b_blocks,),
            in_specs=[
                pl.BlockSpec((bb, L, H), lambda bi: (bi, 0, 0)),     # activations
                pl.BlockSpec((bb, 1, L), lambda bi: (bi, 0, 0)),     # additive attention bias
                pl.BlockSpec((H, 3 * H), lambda bi: (0, 0)),         # fused q|k|v weight (resident)
                pl.BlockSpec((1, 3 * H), lambda bi: (0, 0)),         # fused q|k|v bias   (resident)
                pl.BlockSpec((H, H), lambda bi: (0, 0)),             # o_transform weight (resident)
                pl.BlockSpec((1, H), lambda bi: (0, 0)),             # o_transform bias   (resident)
            ],
            out_specs=pl.BlockSpec((bb, L, H), lambda bi: (bi, 0, 0)),
            scratch_shapes=[pltpu.VMEM((bb * L, H), compute_dtype)],  # combined-heads context
        ),
        compiler_params=pltpu.CompilerParams(
            dimension_semantics=("parallel",),
            vmem_limit_bytes=vmem_limit,
        ),
    )(x, bias3, wqkv, bqkv, wo_c, bo2)


def _xavier_uniform(key, fan_out, fan_in, gain):
    # matches torch.nn.init.xavier_uniform_ on a [out, in] weight
    bound = gain * (6.0 / (fan_in + fan_out)) ** 0.5
    return jax.random.uniform(key, (fan_out, fan_in),
                              minval=-bound, maxval=bound, dtype=jnp.float32)


def init_params(key, hidden_size):
    kq, kk, kv, ko = jax.random.split(key, 4)
    g = 2.0 ** -0.5
    # PyTorch Affine weight is [out, in]; kernel wants [in, out] -> transpose.
    wq = _xavier_uniform(kq, hidden_size, hidden_size, g).T
    wk = _xavier_uniform(kk, hidden_size, hidden_size, g).T
    wv = _xavier_uniform(kv, hidden_size, hidden_size, g).T
    wo = _xavier_uniform(ko, hidden_size, hidden_size, 1.0).T
    zeros = jnp.zeros((hidden_size,), jnp.float32)
    return (wq, zeros, wk, zeros, wv, zeros, wo, zeros)


def _reference(query, bias, params, num_heads):
    """Pure-JAX f32 reference reproducing the PyTorch forward."""
    wq, bq, wk, bk, wv, bv, wo, bo = params
    B, L, H = query.shape
    dh = H // num_heads

    def split_heads(x):
        return jnp.transpose(x.reshape(B, L, num_heads, dh), (0, 2, 1, 3))

    q = query @ wq + bq
    k = query @ wk + bk
    v = query @ wv + bv
    qh = split_heads(q) * dh ** -0.5
    kh = split_heads(k)
    vh = split_heads(v)
    logits = jnp.einsum("bhqd,bhkd->bhqk", qh, kh)
    if bias is not None:
        logits = logits + bias
    w = jax.nn.softmax(logits, axis=-1)
    x = jnp.einsum("bhqk,bhkd->bhqd", w, vh)
    x = jnp.transpose(x, (0, 2, 1, 3)).reshape(B, L, H)
    return x @ wo + bo


if __name__ == "__main__":
    B, L, H, HEADS = 2, 8, 32, 4
    key = jax.random.PRNGKey(0)
    k_q, k_b, k_p = jax.random.split(key, 3)

    query = jax.random.normal(k_q, (B, L, H), dtype=jnp.float32)
    # additive attention bias [batch, 1, 1, length] (0 / -1e9 padding mask)
    mask = (jax.random.uniform(k_b, (B, L)) > 0.2).astype(jnp.float32)
    bias = ((1.0 - mask) * -1e9).reshape(B, 1, 1, L)

    params = init_params(k_p, H)

    out = multihead_attention(query, bias, params, num_heads=HEADS)
    jax.block_until_ready(out)

    ref = _reference(query, bias, params, HEADS)
    assert out.shape == (B, L, H)
    # bf16 operands (f32 accumulation) + approx softmax reciprocal -> ~1% tolerance
    assert jnp.allclose(out, ref, atol=3e-2, rtol=3e-2), "mismatch vs reference"

    print("KERNEL_OK")
</pallas_src>

<mosaic_0001>
module attributes {stable_mosaic.version = 11 : i64} {
  func.func @_mha_kernel(%arg0: i32, %arg1: memref<1x8x32xbf16, #tpu.memory_space<vmem>>, %arg2: memref<1x1x8xf32, #tpu.memory_space<vmem>>, %arg3: memref<32x96xbf16, #tpu.memory_space<vmem>>, %arg4: memref<1x96xf32, #tpu.memory_space<vmem>>, %arg5: memref<32x32xbf16, #tpu.memory_space<vmem>>, %arg6: memref<1x32xf32, #tpu.memory_space<vmem>>, %arg7: memref<1x8x32xf32, #tpu.memory_space<vmem>>, %arg8: memref<8x32xbf16, #tpu.memory_space<vmem>>) attributes {dimension_semantics = [#tpu.dimension_semantics<parallel>], iteration_bounds = array<i64: 2>, scalar_prefetch = 0 : i64, scratch_operands = 1 : i64, tpu.core_type = #tpu.core_type<tc>, window_params = [{transform_indices = @transform_0, window_bounds = array<i64: 1, 8, 32>}, {transform_indices = @transform_1, window_bounds = array<i64: 1, 1, 8>}, {pipeline_mode = #tpu.pipeline_mode<synchronous>, transform_indices = @transform_2, window_bounds = array<i64: 32, 96>}, {pipeline_mode = #tpu.pipeline_mode<synchronous>, transform_indices = @transform_3, window_bounds = array<i64: 1, 96>}, {pipeline_mode = #tpu.pipeline_mode<synchronous>, transform_indices = @transform_4, window_bounds = array<i64: 32, 32>}, {pipeline_mode = #tpu.pipeline_mode<synchronous>, transform_indices = @transform_5, window_bounds = array<i64: 1, 32>}, {transform_indices = @transform_6, window_bounds = array<i64: 1, 8, 32>}]} {
    %c0 = arith.constant 0 : index
    %c0_0 = arith.constant 0 : index
    %c0_1 = arith.constant 0 : index
    %0 = vector.load %arg1[%c0, %c0_0, %c0_1] : memref<1x8x32xbf16, #tpu.memory_space<vmem>>, vector<1x8x32xbf16>
    %1 = vector.shape_cast %0 : vector<1x8x32xbf16> to vector<8x32xbf16>
    %c0_2 = arith.constant 0 : index
    %c0_3 = arith.constant 0 : index
    %c0_4 = arith.constant 0 : index
    %2 = vector.load %arg2[%c0_2, %c0_3, %c0_4] : memref<1x1x8xf32, #tpu.memory_space<vmem>>, vector<1x1x8xf32>
    %c0_5 = arith.constant 0 : index
    %c0_6 = arith.constant 0 : index
    %3 = vector.load %arg3[%c0_5, %c0_6] : memref<32x96xbf16, #tpu.memory_space<vmem>>, vector<32x96xbf16>
    %cst = arith.constant dense<0.000000e+00> : vector<8x96xf32>
    %4 = tpu.matmul %1, %3, %cst {dimension_numbers = #tpu.dot_dimension_numbers<[1], [0], [0], [1], [0, 0, 1, 1], [], []>} : vector<8x32xbf16>, vector<32x96xbf16>, vector<8x96xf32> -> vector<8x96xf32>
    %c0_7 = arith.constant 0 : index
    %c0_8 = arith.constant 0 : index
    %5 = vector.load %arg4[%c0_7, %c0_8] : memref<1x96xf32, #tpu.memory_space<vmem>>, vector<1x96xf32>
    %6 = vector.broadcast %5 : vector<1x96xf32> to vector<8x96xf32>
    %7 = arith.addf %4, %6 : vector<8x96xf32>
    %8 = vector.extract_strided_slice %7 {offsets = [0, 0], sizes = [8, 8], strides = [1, 1]} : vector<8x96xf32> to vector<8x8xf32>
    %9 = arith.truncf %8 : vector<8x8xf32> to vector<8x8xbf16>
    %10 = vector.shape_cast %9 : vector<8x8xbf16> to vector<1x8x8xbf16>
    %11 = vector.extract_strided_slice %7 {offsets = [0, 32], sizes = [8, 8], strides = [1, 1]} : vector<8x96xf32> to vector<8x8xf32>
    %12 = arith.truncf %11 : vector<8x8xf32> to vector<8x8xbf16>
    %13 = vector.shape_cast %12 : vector<8x8xbf16> to vector<1x8x8xbf16>
    %14 = vector.extract_strided_slice %7 {offsets = [0, 64], sizes = [8, 8], strides = [1, 1]} : vector<8x96xf32> to vector<8x8xf32>
    %15 = arith.truncf %14 : vector<8x8xf32> to vector<8x8xbf16>
    %16 = vector.shape_cast %15 : vector<8x8xbf16> to vector<1x8x8xbf16>
    %cst_9 = arith.constant dense<0.000000e+00> : vector<1x8x8xf32>
    %17 = tpu.matmul %10, %13, %cst_9 {dimension_numbers = #tpu.dot_dimension_numbers<[2], [2], [1], [1], [0, 0, 0, 1, 1, 1], [0], [0]>} : vector<1x8x8xbf16>, vector<1x8x8xbf16>, vector<1x8x8xf32> -> vector<1x8x8xf32>
    %18 = vector.broadcast %2 : vector<1x1x8xf32> to vector<1x8x8xf32>
    %19 = arith.addf %17, %18 : vector<1x8x8xf32>
    %cst_10 = arith.constant dense<0xFF800000> : vector<1x8xf32>
    %20 = vector.multi_reduction <maximumf>, %19, %cst_10 [2] : vector<1x8x8xf32> to vector<1x8xf32>
    %21 = vector.shape_cast %20 : vector<1x8xf32> to vector<1x8x1xf32>
    %22 = vector.broadcast %21 : vector<1x8x1xf32> to vector<1x8x8xf32>
    %23 = arith.subf %19, %22 : vector<1x8x8xf32>
    %24 = math.exp %23 : vector<1x8x8xf32>
    %cst_11 = arith.constant dense<0.000000e+00> : vector<1x8xf32>
    %25 = vector.multi_reduction <add>, %24, %cst_11 [2] : vector<1x8x8xf32> to vector<1x8xf32>
    %26 = vector.shape_cast %25 : vector<1x8xf32> to vector<1x8x1xf32>
    %27 = arith.truncf %24 : vector<1x8x8xf32> to vector<1x8x8xbf16>
    %cst_12 = arith.constant dense<0.000000e+00> : vector<1x8x8xf32>
    %28 = tpu.matmul %27, %16, %cst_12 {dimension_numbers = #tpu.dot_dimension_numbers<[2], [1], [1], [2], [0, 0, 0, 1, 1, 2], [0], [0]>} : vector<1x8x8xbf16>, vector<1x8x8xbf16>, vector<1x8x8xf32> -> vector<1x8x8xf32>
    %29 = tpu.reciprocal %26 {approx = true} : vector<1x8x1xf32> -> vector<1x8x1xf32>
    %30 = vector.broadcast %29 : vector<1x8x1xf32> to vector<1x8x8xf32>
    %31 = arith.mulf %28, %30 : vector<1x8x8xf32>
    %32 = vector.shape_cast %31 : vector<1x8x8xf32> to vector<8x8xf32>
    %33 = arith.truncf %32 : vector<8x8xf32> to vector<8x8xbf16>
    %c0_13 = arith.constant 0 : index
    %c0_14 = arith.constant 0 : index
    %34 = vector.load %arg8[%c0_13, %c0_14] : memref<8x32xbf16, #tpu.memory_space<vmem>>, vector<8x8xbf16>
    tpu.vector_store %arg8[%c0_13, %c0_14], %33 {strides = array<i32>} : memref<8x32xbf16, #tpu.memory_space<vmem>>, vector<8x8xbf16>,
    %35 = vector.extract_strided_slice %7 {offsets = [0, 8], sizes = [8, 8], strides = [1, 1]} : vector<8x96xf32> to vector<8x8xf32>
    %36 = arith.truncf %35 : vector<8x8xf32> to vector<8x8xbf16>
    %37 = vector.shape_cast %36 : vector<8x8xbf16> to vector<1x8x8xbf16>
    %38 = vector.extract_strided_slice %7 {offsets = [0, 40], sizes = [8, 8], strides = [1, 1]} : vector<8x96xf32> to vector<8x8xf32>
    %39 = arith.truncf %38 : vector<8x8xf32> to vector<8x8xbf16>
    %40 = vector.shape_cast %39 : vector<8x8xbf16> to vector<1x8x8xbf16>
    %41 = vector.extract_strided_slice %7 {offsets = [0, 72], sizes = [8, 8], strides = [1, 1]} : vector<8x96xf32> to vector<8x8xf32>
    %42 = arith.truncf %41 : vector<8x8xf32> to vector<8x8xbf16>
    %43 = vector.shape_cast %42 : vector<8x8xbf16> to vector<1x8x8xbf16>
    %cst_15 = arith.constant dense<0.000000e+00> : vector<1x8x8xf32>
    %44 = tpu.matmul %37, %40, %cst_15 {dimension_numbers = #tpu.dot_dimension_numbers<[2], [2], [1], [1], [0, 0, 0, 1, 1, 1], [0], [0]>} : vector<1x8x8xbf16>, vector<1x8x8xbf16>, vector<1x8x8xf32> -> vector<1x8x8xf32>
    %45 = vector.broadcast %2 : vector<1x1x8xf32> to vector<1x8x8xf32>
    %46 = arith.addf %44, %45 : vector<1x8x8xf32>
    %cst_16 = arith.constant dense<0xFF800000> : vector<1x8xf32>
    %47 = vector.multi_reduction <maximumf>, %46, %cst_16 [2] : vector<1x8x8xf32> to vector<1x8xf32>
    %48 = vector.shape_cast %47 : vector<1x8xf32> to vector<1x8x1xf32>
    %49 = vector.broadcast %48 : vector<1x8x1xf32> to vector<1x8x8xf32>
    %50 = arith.subf %46, %49 : vector<1x8x8xf32>
    %51 = math.exp %50 : vector<1x8x8xf32>
    %cst_17 = arith.constant dense<0.000000e+00> : vector<1x8xf32>
    %52 = vector.multi_reduction <add>, %51, %cst_17 [2] : vector<1x8x8xf32> to vector<1x8xf32>
    %53 = vector.shape_cast %52 : vector<1x8xf32> to vector<1x8x1xf32>
    %54 = arith.truncf %51 : vector<1x8x8xf32> to vector<1x8x8xbf16>
    %cst_18 = arith.constant dense<0.000000e+00> : vector<1x8x8xf32>
    %55 = tpu.matmul %54, %43, %cst_18 {dimension_numbers = #tpu.dot_dimension_numbers<[2], [1], [1], [2], [0, 0, 0, 1, 1, 2], [0], [0]>} : vector<1x8x8xbf16>, vector<1x8x8xbf16>, vector<1x8x8xf32> -> vector<1x8x8xf32>
    %56 = tpu.reciprocal %53 {approx = true} : vector<1x8x1xf32> -> vector<1x8x1xf32>
    %57 = vector.broadcast %56 : vector<1x8x1xf32> to vector<1x8x8xf32>
    %58 = arith.mulf %55, %57 : vector<1x8x8xf32>
    %59 = vector.shape_cast %58 : vector<1x8x8xf32> to vector<8x8xf32>
    %60 = arith.truncf %59 : vector<8x8xf32> to vector<8x8xbf16>
    %c0_19 = arith.constant 0 : index
    %c8 = arith.constant 8 : index
    %61 = vector.load %arg8[%c0_19, %c8] : memref<8x32xbf16, #tpu.memory_space<vmem>>, vector<8x8xbf16>
    tpu.vector_store %arg8[%c0_19, %c8], %60 {strides = array<i32>} : memref<8x32xbf16, #tpu.memory_space<vmem>>, vector<8x8xbf16>,
    %62 = vector.extract_strided_slice %7 {offsets = [0, 16], sizes = [8, 8], strides = [1, 1]} : vector<8x96xf32> to vector<8x8xf32>
    %63 = arith.truncf %62 : vector<8x8xf32> to vector<8x8xbf16>
    %64 = vector.shape_cast %63 : vector<8x8xbf16> to vector<1x8x8xbf16>
    %65 = vector.extract_strided_slice %7 {offsets = [0, 48], sizes = [8, 8], strides = [1, 1]} : vector<8x96xf32> to vector<8x8xf32>
    %66 = arith.truncf %65 : vector<8x8xf32> to vector<8x8xbf16>
    %67 = vector.shape_cast %66 : vector<8x8xbf16> to vector<1x8x8xbf16>
    %68 = vector.extract_strided_slice %7 {offsets = [0, 80], sizes = [8, 8], strides = [1, 1]} : vector<8x96xf32> to vector<8x8xf32>
    %69 = arith.truncf %68 : vector<8x8xf32> to vector<8x8xbf16>
    %70 = vector.shape_cast %69 : vector<8x8xbf16> to vector<1x8x8xbf16>
    %cst_20 = arith.constant dense<0.000000e+00> : vector<1x8x8xf32>
    %71 = tpu.matmul %64, %67, %cst_20 {dimension_numbers = #tpu.dot_dimension_numbers<[2], [2], [1], [1], [0, 0, 0, 1, 1, 1], [0], [0]>} : vector<1x8x8xbf16>, vector<1x8x8xbf16>, vector<1x8x8xf32> -> vector<1x8x8xf32>
    %72 = vector.broadcast %2 : vector<1x1x8xf32> to vector<1x8x8xf32>
    %73 = arith.addf %71, %72 : vector<1x8x8xf32>
    %cst_21 = arith.constant dense<0xFF800000> : vector<1x8xf32>
    %74 = vector.multi_reduction <maximumf>, %73, %cst_21 [2] : vector<1x8x8xf32> to vector<1x8xf32>
    %75 = vector.shape_cast %74 : vector<1x8xf32> to vector<1x8x1xf32>
    %76 = vector.broadcast %75 : vector<1x8x1xf32> to vector<1x8x8xf32>
    %77 = arith.subf %73, %76 : vector<1x8x8xf32>
    %78 = math.exp %77 : vector<1x8x8xf32>
    %cst_22 = arith.constant dense<0.000000e+00> : vector<1x8xf32>
    %79 = vector.multi_reduction <add>, %78, %cst_22 [2] : vector<1x8x8xf32> to vector<1x8xf32>
    %80 = vector.shape_cast %79 : vector<1x8xf32> to vector<1x8x1xf32>
    %81 = arith.truncf %78 : vector<1x8x8xf32> to vector<1x8x8xbf16>
    %cst_23 = arith.constant dense<0.000000e+00> : vector<1x8x8xf32>
    %82 = tpu.matmul %81, %70, %cst_23 {dimension_numbers = #tpu.dot_dimension_numbers<[2], [1], [1], [2], [0, 0, 0, 1, 1, 2], [0], [0]>} : vector<1x8x8xbf16>, vector<1x8x8xbf16>, vector<1x8x8xf32> -> vector<1x8x8xf32>
    %83 = tpu.reciprocal %80 {approx = true} : vector<1x8x1xf32> -> vector<1x8x1xf32>
    %84 = vector.broadcast %83 : vector<1x8x1xf32> to vector<1x8x8xf32>
    %85 = arith.mulf %82, %84 : vector<1x8x8xf32>
    %86 = vector.shape_cast %85 : vector<1x8x8xf32> to vector<8x8xf32>
    %87 = arith.truncf %86 : vector<8x8xf32> to vector<8x8xbf16>
    %c0_24 = arith.constant 0 : index
    %c16 = arith.constant 16 : index
    %88 = vector.load %arg8[%c0_24, %c16] : memref<8x32xbf16, #tpu.memory_space<vmem>>, vector<8x8xbf16>
    tpu.vector_store %arg8[%c0_24, %c16], %87 {strides = array<i32>} : memref<8x32xbf16, #tpu.memory_space<vmem>>, vector<8x8xbf16>,
    %89 = vector.extract_strided_slice %7 {offsets = [0, 24], sizes = [8, 8], strides = [1, 1]} : vector<8x96xf32> to vector<8x8xf32>
    %90 = arith.truncf %89 : vector<8x8xf32> to vector<8x8xbf16>
    %91 = vector.shape_cast %90 : vector<8x8xbf16> to vector<1x8x8xbf16>
    %92 = vector.extract_strided_slice %7 {offsets = [0, 56], sizes = [8, 8], strides = [1, 1]} : vector<8x96xf32> to vector<8x8xf32>
    %93 = arith.truncf %92 : vector<8x8xf32> to vector<8x8xbf16>
    %94 = vector.shape_cast %93 : vector<8x8xbf16> to vector<1x8x8xbf16>
    %95 = vector.extract_strided_slice %7 {offsets = [0, 88], sizes = [8, 8], strides = [1, 1]} : vector<8x96xf32> to vector<8x8xf32>
    %96 = arith.truncf %95 : vector<8x8xf32> to vector<8x8xbf16>
    %97 = vector.shape_cast %96 : vector<8x8xbf16> to vector<1x8x8xbf16>
    %cst_25 = arith.constant dense<0.000000e+00> : vector<1x8x8xf32>
    %98 = tpu.matmul %91, %94, %cst_25 {dimension_numbers = #tpu.dot_dimension_numbers<[2], [2], [1], [1], [0, 0, 0, 1, 1, 1], [0], [0]>} : vector<1x8x8xbf16>, vector<1x8x8xbf16>, vector<1x8x8xf32> -> vector<1x8x8xf32>
    %99 = vector.broadcast %2 : vector<1x1x8xf32> to vector<1x8x8xf32>
    %100 = arith.addf %98, %99 : vector<1x8x8xf32>
    %cst_26 = arith.constant dense<0xFF800000> : vector<1x8xf32>
    %101 = vector.multi_reduction <maximumf>, %100, %cst_26 [2] : vector<1x8x8xf32> to vector<1x8xf32>
    %102 = vector.shape_cast %101 : vector<1x8xf32> to vector<1x8x1xf32>
    %103 = vector.broadcast %102 : vector<1x8x1xf32> to vector<1x8x8xf32>
    %104 = arith.subf %100, %103 : vector<1x8x8xf32>
    %105 = math.exp %104 : vector<1x8x8xf32>
    %cst_27 = arith.constant dense<0.000000e+00> : vector<1x8xf32>
    %106 = vector.multi_reduction <add>, %105, %cst_27 [2] : vector<1x8x8xf32> to vector<1x8xf32>
    %107 = vector.shape_cast %106 : vector<1x8xf32> to vector<1x8x1xf32>
    %108 = arith.truncf %105 : vector<1x8x8xf32> to vector<1x8x8xbf16>
    %cst_28 = arith.constant dense<0.000000e+00> : vector<1x8x8xf32>
    %109 = tpu.matmul %108, %97, %cst_28 {dimension_numbers = #tpu.dot_dimension_numbers<[2], [1], [1], [2], [0, 0, 0, 1, 1, 2], [0], [0]>} : vector<1x8x8xbf16>, vector<1x8x8xbf16>, vector<1x8x8xf32> -> vector<1x8x8xf32>
    %110 = tpu.reciprocal %107 {approx = true} : vector<1x8x1xf32> -> vector<1x8x1xf32>
    %111 = vector.broadcast %110 : vector<1x8x1xf32> to vector<1x8x8xf32>
    %112 = arith.mulf %109, %111 : vector<1x8x8xf32>
    %113 = vector.shape_cast %112 : vector<1x8x8xf32> to vector<8x8xf32>
    %114 = arith.truncf %113 : vector<8x8xf32> to vector<8x8xbf16>
    %c0_29 = arith.constant 0 : index
    %c24 = arith.constant 24 : index
    %115 = vector.load %arg8[%c0_29, %c24] : memref<8x32xbf16, #tpu.memory_space<vmem>>, vector<8x8xbf16>
    tpu.vector_store %arg8[%c0_29, %c24], %114 {strides = array<i32>} : memref<8x32xbf16, #tpu.memory_space<vmem>>, vector<8x8xbf16>,
    %c0_30 = arith.constant 0 : index
    %c0_31 = arith.constant 0 : index
    %116 = vector.load %arg8[%c0_30, %c0_31] : memref<8x32xbf16, #tpu.memory_space<vmem>>, vector<8x32xbf16>
    %c0_32 = arith.constant 0 : index
    %c0_33 = arith.constant 0 : index
    %117 = vector.load %arg5[%c0_32, %c0_33] : memref<32x32xbf16, #tpu.memory_space<vmem>>, vector<32x32xbf16>
    %cst_34 = arith.constant dense<0.000000e+00> : vector<8x32xf32>
    %118 = tpu.matmul %116, %117, %cst_34 {dimension_numbers = #tpu.dot_dimension_numbers<[1], [0], [0], [1], [0, 0, 1, 1], [], []>} : vector<8x32xbf16>, vector<32x32xbf16>, vector<8x32xf32> -> vector<8x32xf32>
    %c0_35 = arith.constant 0 : index
    %c0_36 = arith.constant 0 : index
    %119 = vector.load %arg6[%c0_35, %c0_36] : memref<1x32xf32, #tpu.memory_space<vmem>>, vector<1x32xf32>
    %120 = vector.broadcast %119 : vector<1x32xf32> to vector<8x32xf32>
    %121 = arith.addf %118, %120 : vector<8x32xf32>
    %122 = vector.shape_cast %121 : vector<8x32xf32> to vector<1x8x32xf32>
    %c0_37 = arith.constant 0 : index
    %c0_38 = arith.constant 0 : index
    %c0_39 = arith.constant 0 : index
    %123 = vector.load %arg7[%c0_37, %c0_38, %c0_39] : memref<1x8x32xf32, #tpu.memory_space<vmem>>, vector<1x8x32xf32>
    tpu.vector_store %arg7[%c0_37, %c0_38, %c0_39], %122 {strides = array<i32>} : memref<1x8x32xf32, #tpu.memory_space<vmem>>, vector<1x8x32xf32>,
    return
  }
  func.func @transform_0(%arg0: i32) -> (i32, i32, i32) {
    %c0_i32 = arith.constant 0 : i32
    %c0_i32_0 = arith.constant 0 : i32
    %c0_i32_1 = arith.constant 0 : i32
    return %arg0, %c0_i32, %c0_i32_0 : i32, i32, i32
  }
  func.func @transform_1(%arg0: i32) -> (i32, i32, i32) {
    %c0_i32 = arith.constant 0 : i32
    %c0_i32_0 = arith.constant 0 : i32
    %c0_i32_1 = arith.constant 0 : i32
    return %arg0, %c0_i32, %c0_i32_0 : i32, i32, i32
  }
  func.func @transform_2(%arg0: i32) -> (i32, i32) {
    %c0_i32 = arith.constant 0 : i32
    %c0_i32_0 = arith.constant 0 : i32
    %c0_i32_1 = arith.constant 0 : i32
    return %c0_i32, %c0_i32_0 : i32, i32
  }
  func.func @transform_3(%arg0: i32) -> (i32, i32) {
    %c0_i32 = arith.constant 0 : i32
    %c0_i32_0 = arith.constant 0 : i32
    %c0_i32_1 = arith.constant 0 : i32
    return %c0_i32, %c0_i32_0 : i32, i32
  }
  func.func @transform_4(%arg0: i32) -> (i32, i32) {
    %c0_i32 = arith.constant 0 : i32
    %c0_i32_0 = arith.constant 0 : i32
    %c0_i32_1 = arith.constant 0 : i32
    return %c0_i32, %c0_i32_0 : i32, i32
  }
  func.func @transform_5(%arg0: i32) -> (i32, i32) {
    %c0_i32 = arith.constant 0 : i32
    %c0_i32_0 = arith.constant 0 : i32
    %c0_i32_1 = arith.constant 0 : i32
    return %c0_i32, %c0_i32_0 : i32, i32
  }
  func.func @transform_6(%arg0: i32) -> (i32, i32, i32) {
    %c0_i32 = arith.constant 0 : i32
    %c0_i32_0 = arith.constant 0 : i32
    %c0_i32_1 = arith.constant 0 : i32
    return %arg0, %c0_i32, %c0_i32_0 : i32, i32, i32
  }
}

</mosaic_0001>

<bundles_post_ra>
// kernel: tpu_custom_call.1
= control target key start
LH: loop header
LB: loop body
LE: loop exit
PB: predicated region body
PF: predicated region fallthrough
CT: control target
= control target key end

     0   :  { %11 = vsyncpa [#allocation4], 0  ;;  %s1797_s0 = inlined_call_operand.hbm [shape: bf16[2,8,32], index: 0, kind: input, shape index: {}]   ;;  %s1798_s1 = inlined_call_operand.vmem [shape: f32[2,1,8], index: 1, kind: input, shape index: {}]   ;;  %s1799_s2 = inlined_call_operand.hbm [shape: bf16[32,96], index: 2, kind: input, shape index: {}]   ;;  %s1800_s3 = inlined_call_operand.vmem [shape: f32[1,96], index: 3, kind: input, shape index: {}]   ;;  %s1801_s4 = inlined_call_operand.hbm [shape: bf16[32,32], index: 4, kind: input, shape index: {}]   ;;  %s1802_s5 = inlined_call_operand.vmem [shape: f32[1,32], index: 5, kind: input, shape index: {}]   ;;  %s1803_s6 = inlined_call_operand.hbm [shape: f32[2,8,32], index: 6, kind: output, shape index: {}]  }
   0x1   :  { %13 = vsyncpa [#allocation4 + $0x1], 0 }
   0x2   :  { %14 = vsyncpa [#allocation7], 0 }
   0x3   :  { %15 = vsyncpa [#allocation5], 0 }
   0x4   :  { %17 = vsyncpa [#allocation5 + $0x1], 0  ;;  %s1483_s21 = smov 0   ;;  %s1485_s22 = smov 0  }
   0x5   :  { %s1487_s23 = smov 0   ;;  %s1489_s24 = smov 0  }
   0x6 LB: > { %s1504_s25 = sadd.s32 4294967295, %s1424_s24   ;;  %s1038_s26 = sadd.s32 4294967294, %s1424_s24   ;;  %s1424_s24 = sphi %s1489_s24, %s1823_s24   ;;  %s1420_s23 = sphi %s1487_s23, %s1822_s23   ;;  %s1416_s22 = sphi %s1485_s22, %s1821_s22   ;;  %s1412_s21 = sphi %s1483_s21, %s1820_s21  }
   0x7   : > { %p43_p0 = scmp.ne.s32.totalorder %s1416_s22, %s1412_s21  ;;  %p1804_p1 = scmp.eq.s32.totalorder %s1504_s25, 0 }
   0x8   : > { %p183_p3 = scmp.eq.s32.totalorder %s1038_s26, 1  ;;  %p1039_p5 = scmp.ge.s32.totalorder %s1424_s24, 1 }
   0x9   : > { %p1513_p4 = por %p1804_p1, %p43_p0  ;;  %p190_p7 = scmp.lt.s32.totalorder %s1424_s24, 3 }
   0xa   : > { %p1518_p6 = por %p183_p3, %p43_p0  ;;  %s1426_s30 = smov [#allocation6]  }
   0xb   : > { %s1807_s27 = scalar_select %p1513_p4, 1, 0 }
   0xc   : > { %s1808_s28 = scalar_select %p1518_p6, 1, 0 }
   0xd   : > { %p1523_p8 = pnand %p1039_p5, %p190_p7  ;;  %s202_s7 = sshll.u32 %s1426_s30, 4  ;;  %s1527_s7 = int_to_ptr.vmem [resolvable:$true] %s202_s7 }
   0xe   : > { %s1427_s9 = smov [#allocation8]   ;;  %s1268_s13 = scalar_lea.hbm %s1799_s2, 256 }
   0xf   : > { %p1175_p9 = pneg %p1523_p8  ;;  %s218_s10 = sshll.u32 %s1427_s9, 4  ;;  %s1538_s10 = int_to_ptr.vmem [resolvable:$true] %s218_s10 }
  0x10   : > { %p1269_p12 = scmp.ne.s32.totalorder %s1799_s2, %s1268_s13  ;;  %p1275_p5 = scmp.lt.u32.totalorder %s1268_s13, %s1799_s2 }
  0x11   : > { %p1534_p11 = pnand %p1175_p9, %p1804_p1 }
  0x13   : > { %p1270_p13 = pneg %p1534_p11 }
  0x15   : > { %p1271_p0 = pnand %p1270_p13, %p1269_p12 }
  0x17   : > { %p1272_p3 = pneg %p1271_p0 }
  0x19   : > { %p1277_p7 = pnand %p1275_p5, %p1272_p3 }
  0x1b   : > { %1280 = shalt.err (!%p1277_p7)
}
  0x1c   : > { %s1281_s18 = scalar_lea.vmem %s1527_s7, 256  ;;  %p1289_p2 = scmp.lt.s32.totalorder %s1527_s7, %s1527_s7 }
  0x1d   : > { %p1282_p9 = scmp.ne.s32.totalorder %s1527_s7, %s1281_s18  ;;  %p1290_p12 = scmp.lt.s32.totalorder %s1281_s18, %s1281_s18 }
  0x1f   : > { %p1284_p10 = pnand %p1282_p9, %p1270_p13  ;;  %p1291_p0 = por %p1290_p12, %p1289_p2 }
  0x21   : > { %p1285_p1 = pneg %p1284_p10 }
  0x23   : > { %p1292_p6 = pnand %p1291_p0, %p1285_p1 }
  0x25   : > { %1295 = shalt.err (!%p1292_p6)
}
  0x26   : > { %s1428_s19 = smov 64   ;;  %s1429_s20 = smov 4  }
  0x27   : > { %1178 = dma.hbm_to_vmem [thread:$0]  (!%p1534_p11), %s1799_s2, 256, %s1527_s7, [#allocation7], %s1428_s19, %s1428_s19, %s1429_s20  }
  0x28   : > { %s1296_s12 = scalar_lea.hbm %s1801_s4, 256 }
  0x29   : > { %p1297_p2 = scmp.ne.s32.totalorder %s1801_s4, %s1296_s12  ;;  %p1303_p10 = scmp.lt.u32.totalorder %s1296_s12, %s1801_s4 }
  0x2b   : > { %p1299_p1 = pnand %p1297_p2, %p1270_p13 }
  0x2d   : > { %p1300_p6 = pneg %p1299_p1 }
  0x2f   : > { %p1305_p3 = pnand %p1303_p10, %p1300_p6 }
  0x31   : > { %1308 = shalt.err (!%p1305_p3)
}
  0x32   : > { %s1309_s7 = scalar_lea.vmem %s1538_s10, 256  ;;  %p1317_p12 = scmp.lt.s32.totalorder %s1538_s10, %s1538_s10 }
  0x33   : > { %p1310_p5 = scmp.ne.s32.totalorder %s1538_s10, %s1309_s7  ;;  %p1318_p0 = scmp.lt.s32.totalorder %s1309_s7, %s1309_s7 }
  0x35   : > { %p1312_p7 = pnand %p1310_p5, %p1270_p13  ;;  %p1319_p2 = por %p1318_p0, %p1317_p12 }
  0x37   : > { %p1313_p9 = pneg %p1312_p7 }
  0x39   : > { %p1320_p1 = pnand %p1319_p2, %p1313_p9 }
  0x3b   : > { %1323 = shalt.err (!%p1320_p1)
}
  0x3c   : > { %1181 = dma.hbm_to_vmem [thread:$0]  (!%p1534_p11), %s1801_s4, 256, %s1538_s10, [#allocation7], %s1428_s19, %s1428_s19, %s1429_s20  }
  0x3d   : > { %s1593_s26 = sadd.s32 1, %s1424_s24   ;;  %s30_s8 = sadd.s32 1, %s1420_s23 }
  0x3e   : > { %s27_s30 = ssub.s32 %s1424_s24, %s1593_s26  ;;  %p37_p13 = scmp.ne.s32.totalorder %s1420_s23, %s1416_s22 }
  0x3f   : > { %p28_p6 = scmp.eq.s32.totalorder %s27_s30, 0  ;;  %p38_p10 = scmp.eq.s32.totalorder %s1424_s24, 0 }
  0x40   : > { %p1811_p3 = scmp.eq.s32.totalorder %s1504_s25, 1  ;;  %p1192_p7 = scmp.lt.s32.totalorder %s1424_s24, 2 }
  0x41   : > { %s1609_s11 = scalar_select %p28_p6, %s1420_s23, %s30_s8  }
  0x42   : > { %p1603_p5 = por %p1811_p3, %p37_p13  ;;  %p39_p9 = por %p38_p10, %p37_p13 }
  0x43   : > { %s235_s12 = sand.u32 1, %s1420_s23   ;;  %s1044_s10 = sshll.u32 %s1424_s24, 6 }
  0x44   : > { %s1812_s9 = scalar_select %p1603_p5, 1, 0 }
  0x45   : > { %s1043_s13 = sshll.u32 %s235_s12, 2  ;;  %s1616_s14 = scalar_lea.hbm %s1797_s0, %s1044_s10 }
  0x46   : > { %s239_s15 = scalar_lea.vmem [#allocation3], %s1043_s13  ;;  %p1620_p11 = pnand %p1192_p7, %p39_p9 }
  0x47   : > { %s246_s16 = sshll.u32 %s239_s15, 4  ;;  %s236_s17 = scalar_lea.sflag [#allocation4], %s235_s12  ;;  %s1618_s16 = int_to_ptr.vmem [resolvable:$true] %s246_s16 }
  0x48   : > { %s1324_s18 = scalar_lea.hbm %s1616_s14, 64  ;;  %p1326_p0 = pneg %p1620_p11 }
  0x49   : > { %p1325_p12 = scmp.ne.s32.totalorder %s1616_s14, %s1324_s18  ;;  %s1329_s13 = scalar_lea.hbm %s1797_s0, 128 }
  0x4a   : > { %p1330_p13 = scmp.lt.u32.totalorder %s1616_s14, %s1797_s0  ;;  %p1331_p6 = scmp.lt.u32.totalorder %s1329_s13, %s1324_s18 }
  0x4b   : > { %p1327_p2 = pnand %p1326_p0, %p1325_p12  ;;  %p1333_p3 = scmp.lt.u32.totalorder %s1324_s18, %s1616_s14 }
  0x4c   : > { %p1332_p10 = por %p1331_p6, %p1330_p13 }
  0x4d   : > { %p1328_p1 = pneg %p1327_p2 }
  0x4e   : > { %p1334_p7 = por %p1333_p3, %p1332_p10 }
  0x50   : > { %p1335_p9 = pnand %p1334_p7, %p1328_p1 }
  0x52   : > { %1338 = shalt.err (!%p1335_p9)
}
  0x53   : > { %s1339_s12 = scalar_lea.vmem %s1618_s16, 64  ;;  %s1430_s20 = smov [#allocation3]  }
  0x54   : > { %p1340_p12 = scmp.ne.s32.totalorder %s1618_s16, %s1339_s12  ;;  %s1344_s15 = sshll.u32 %s1430_s20, 4  ;;  %s1345_s15 = int_to_ptr.vmem [resolvable:$false] %s1344_s15 }
  0x55   : > { %s1346_s8 = scalar_lea.vmem %s1345_s15, 128  ;;  %p1347_p4 = scmp.lt.s32.totalorder %s1618_s16, %s1345_s15 }
  0x56   : > { %p1342_p2 = pnand %p1340_p12, %p1326_p0  ;;  %p1348_p13 = scmp.lt.s32.totalorder %s1346_s8, %s1339_s12 }
  0x58   : > { %p1343_p5 = pneg %p1342_p2  ;;  %p1349_p6 = por %p1348_p13, %p1347_p4 }
  0x5a   : > { %p1350_p10 = pnand %p1349_p6, %p1343_p5 }
  0x5c   : > { %1353 = shalt.err (!%p1350_p10)
}
  0x5d   : > { %1185 = dma.hbm_to_vmem [thread:$0]  (!%p1620_p11), %s1616_s14, 64, %s1618_s16, %s236_s17  }
  0x5e   : > { %261 = sbr.rel (%p1523_p8) target bundleno = 1448 (0x5a8), region = 44  ;;  %s1652_s18 = sand.u32 (!%p1523_p8), 1, %s1416_s22  }
  0x5f   : > { %s1046_s30 = sshll.u32 (!%p1523_p8), %s1652_s18, 2  ;;  %s264_s13 = scalar_lea.sflag (!%p1523_p8), [#allocation4], %s1652_s18 }
  0x60   : > { %s267_s10 = scalar_lea.vmem (!%p1523_p8), [#allocation3], %s1046_s30  ;;  %p1814_p4 = scmp.ne.s32.totalorder (!%p1523_p8), %s1807_s27, 0 }
  0x65   : > { %1399 = dma.done.wait (%p1814_p4), %s264_s13, 64  }
  0x66   : > { %1401 = vsyncadd (%p1814_p4), %s264_s13, 4294967232  ;;  %p1815_p5 = scmp.eq.s32.totalorder %s1504_s25, 0 }
  0x68   : > { %1403 = dma.done.wait (%p1815_p5), [#allocation7], 512   ;;  %p1816_p11 = pmov %p1815_p5 }
  0x69   : > { %v1431_v0 = vmov 0.0   ;;  %vm1432_vm0 = vmmov 0   ;;  %v1248_v1 = vld [vmem:[#allocation6] sm:$0xff]   ;;  %v1249_v2 = vld [vmem:[#allocation6 + $0x8] sm:$0xff]   ;;  %v311_v3 = vld [vmem:[%s267_s10] sm:$0xf] }
  0x6a   : > { %1405 = vsyncadd (%p1816_p11), [#allocation7], 4294966784  ;;  %1099 = vmatprep.subr.bf16.mxu0 %v1431_v0  ;;  %1103 = vmatprep.mubr.msk.bf16.mxu0 %vm1432_vm0, %v1431_v0  ;;  %vm336_vm1 = vcmask 261120   ;;  %v1050_v4 = vld [vmem:[%s1800_s3] ss:$0 sm:$0xff]  ;;  %s1433_s14 = smov 120  }
  0x6b   : > { %1107 = vmatprep.subr.bf16.mxu1 %v1431_v0  ;;  %1109 = vmatprep.mubr.msk.bf16.mxu1 %vm1432_vm0, %v1431_v0  ;;  %s1434_s16 = smov 96   ;;  %s1435_s7 = smov 80   ;;  %vm390_vm2 = vcmask 64512   ;;  %vm452_vm3 = vcmask 1043456   ;;  %vm499_vm4 = vcmask 60416   ;;  %vm618_vm5 = vcmask 126016  }
  0x6c   : > { %1100 = vmatpush3.bf16.msra.mxu0 %v1248_v1  ;;  %s1436_s17 = smov 88   ;;  %s1437_s19 = smov 72   ;;  %vm737_vm6 = vcmask 191616   ;;  %vm856_vm7 = vcmask 257216  }
  0x6d   : > { %1101 = vmatprep.subr.bf16.mxu0 %v1431_v0  ;;  %s1438_s12 = smov 112   ;;  %s1439_s20 = smov 104  }
  0x6e   : > { %p307_p8 = scmp.lt.s32.totalorder %s1504_s25, 1  ;;  %s1440_s10 = smov 56  }
  0x6f   : > { %s1441_s27 = smov 64   ;;  %s1442_s29 = smov 40  }
  0x70   : > { %1102 = vmatpush3.bf16.msra.mxu0 %v1249_v2  ;;  %s308_s15 = scalar_select %p307_p8, %s1504_s25, 1 }
  0x71   : > { %1113 = vmatprep.subr.bf16.mxu0 %v1431_v0  ;;  %p1817_p1 = scmp.ne.s32.totalorder %s1812_s9, 0 }
  0x72   : > { %s309_s13 = scalar_lea.vmem %s1798_s1, %s308_s15  ;;  %s1071_s15 = sshll.u32 %s1504_s25, 7 }
  0x73   : > { %1104 = vmatmul.mubr.msk.bf16.vlgmr.msra.gmra.mrb[0].mxu0 %vm336_vm1, %v311_v3  ;;  %v1054_v22 = vld [vmem:[%s309_s13] ss:$0 sm:$0xff]  ;;  %s927_s25 = scalar_lea.sflag [#allocation5], %s1652_s18 }
  0x74   : > { %1115 = vmatprep.mubr.msk.bf16.mxu0 %vm1432_vm0, %v1431_v0 }
 0x146   : > { %v374_v5 = vpop.f32.mrb[0].mxu0 }
 0x147   : > { %v375_v6 = vadd.f32 %v1050_v4, %v374_v5  ;;  %v1105_v7 = vpop.f32.mrb[1].mxu0 }
 0x148   : > { %v377_v8 = vpop.f32.mrb[2].mxu0 }
 0x149   : > { %v1678_v9 = vpack.c.bf16 %v375_v6, %v375_v6  ;;  %v1106_v10 = vpop.f32.mrb[3].mxu0 }
 0x14b   : > { %501 = vrot.lane.b32.xlu1 %v1678_v9, %s1433_s14  ;;  %388 = vrot.lane.b32.xlu0 %v1678_v9, %s1434_s16  ;;  %s1443_s14 = smov 48   ;;  %s1444_s16 = smov 8  }
 0x14f   : > { %622 = vrot.lane.b32.xlu1 %v1678_v9, %s1435_s7  ;;  %503 = vrot.lane.b32.xlu0 %v1678_v9, %s1436_s17  ;;  %s1445_s7 = smov 16   ;;  %s1446_s17 = smov 24  }
 0x153   : > { %741 = vrot.lane.b32.xlu1 %v1678_v9, %s1437_s19  ;;  %620 = vrot.lane.b32.xlu0 %v1678_v9, %s1438_s12  ;;  %s1049_s19 = sshll.u32 %s1652_s18, 3 }
 0x154   : > { %s306_s8 = scalar_lea.vmem [#allocation9], %s1049_s19 }
 0x155   : > { %s940_s30 = sshll.u32 %s306_s8, 4  ;;  %s1754_s30 = int_to_ptr.vmem [resolvable:$true] %s940_s30 }
 0x157   : > { %739 = vrot.lane.b32.xlu0 %v1678_v9, %s1439_s20 }
 0x1bd   : > { %v389_v11 = vpop.permute.xlu0 %388  ;;  %v502_v14 = vpop.permute.xlu1 %501 }
 0x1be   : > { %v395_v12 = vsel %vm390_vm2, %v389_v11, 0 }
 0x1bf   : > { %1108 = vmatpush3.bf16.xpose.msra.mxu1 %v395_v12 }
 0x1c0   : > { %1119 = vmatprep.subr.bf16.mxu1 %v1431_v0 }
 0x1c1   : > { %v504_v13 = vpop.permute.xlu0 %503  ;;  %v623_v16 = vpop.permute.xlu1 %622 }
 0x1c2   : > { %v509_v15 = vsel %vm390_vm2, %v504_v13, 0  ;;  %v628_v17 = vsel %vm390_vm2, %v623_v16, 0 }
 0x1c5   : > { %v742_v18 = vpop.permute.xlu1 %741  ;;  %v621_v19 = vpop.permute.xlu0 %620 }
 0x1c6   : > { %1110 = vmatmul.mubr.msk.bf16.vlgmr.msra.gmra.mrb[0].mxu1 %vm390_vm2, %v1678_v9  ;;  %v747_v20 = vsel %vm390_vm2, %v742_v18, 0 }
 0x1c7   : > { %1120 = vmatpush3.bf16.xpose.msra.mxu1 %v509_v15  ;;  %1121 = vmatprep.mubr.msk.bf16.mxu1 %vm1432_vm0, %v1431_v0 }
 0x1c8   : > { %1131 = vmatprep.subr.bf16.mxu1 %v1431_v0 }
 0x1c9   : > { %v740_v21 = vpop.permute.xlu0 %739 }
 0x1ce   : > { %1122 = vmatmul.mubr.msk.bf16.vlgmr.msra.gmra.mrb[4].mxu1 %vm390_vm2, %v502_v14 }
 0x1cf   : > { %1132 = vmatpush3.bf16.xpose.msra.mxu1 %v628_v17  ;;  %1133 = vmatprep.mubr.msk.bf16.mxu1 %vm1432_vm0, %v1431_v0 }
 0x1d0   : > { %1143 = vmatprep.subr.bf16.mxu1 %v1431_v0 }
 0x1d6   : > { %1134 = vmatmul.mubr.msk.bf16.vlgmr.msra.gmra.mrb[8].mxu1 %vm390_vm2, %v621_v19 }
 0x1d7   : > { %1144 = vmatpush3.bf16.xpose.msra.mxu1 %v747_v20  ;;  %1145 = vmatprep.mubr.msk.bf16.mxu1 %vm1432_vm0, %v1431_v0 }
 0x1d8   : > { %1155 = vmatprep.subr.bf16.mxu1 %v1431_v0 }
 0x1de   : > { %1146 = vmatmul.mubr.msk.bf16.vlgmr.msra.gmra.mrb[12].mxu1 %vm390_vm2, %v740_v21 }
 0x1df   : > { %1159 = vmatprep.mubr.msk.bf16.mxu1 %vm1432_vm0, %v1431_v0 }
 0x299   : > { %v431_v23 = vpop.f32.mrb[0].mxu1 }
 0x29a   : > { %v432_v24 = vadd.f32 %v1054_v22, %v431_v23  ;;  %v1111_v25 = vpop.f32.mrb[1].mxu1 }
 0x29b   : > { %v434_v26 = vpop.f32.mrb[2].mxu1 }
 0x29c   : > { %v1112_v27 = vpop.f32.mrb[3].mxu1  ;;  %v437_v28 = vsel %vm390_vm2, %v432_v24, -inf }
 0x29d   : > { %438 = vmax.xlane.f32.xlu1 %v437_v28 }
 0x2a1   : > { %v545_v29 = vpop.f32.mrb[4].mxu1 }
 0x2a2   : > { %v546_v30 = vadd.f32 %v1054_v22, %v545_v29  ;;  %v1123_v31 = vpop.f32.mrb[5].mxu1 }
 0x2a3   : > { %v548_v32 = vpop.f32.mrb[6].mxu1 }
 0x2a4   : > { %v1124_v33 = vpop.f32.mrb[7].mxu1  ;;  %v551_v34 = vsel %vm390_vm2, %v546_v30, -inf }
 0x2a5   : > { %552 = vmax.xlane.f32.xlu0 %v551_v34 }
 0x2a9   : > { %v664_v35 = vpop.f32.mrb[8].mxu1 }
 0x2aa   : > { %v665_v36 = vadd.f32 %v1054_v22, %v664_v35  ;;  %v1135_v37 = vpop.f32.mrb[9].mxu1 }
 0x2ab   : > { %v667_v38 = vpop.f32.mrb[10].mxu1 }
 0x2ac   : > { %v1136_v39 = vpop.f32.mrb[11].mxu1  ;;  %v670_v40 = vsel %vm390_vm2, %v665_v36, -inf }
 0x2ad   : > { %671 = vmax.xlane.f32.xlu0 %v670_v40  ;;  %v1251_v40 = vld [vmem:[#allocation8 + $0x8] sm:$0xff]  }
 0x2ae   : > { %561 = vrot.lane.b32.xlu1 %v1678_v9, %s1440_s10 }
 0x2b1   : > { %v783_v41 = vpop.f32.mrb[12].mxu1 }
 0x2b2   : > { %v1147_v42 = vpop.f32.mrb[13].mxu1  ;;  %v784_v45 = vadd.f32 %v1054_v22, %v783_v41 }
 0x2b3   : > { %v786_v43 = vpop.f32.mrb[14].mxu1 }
 0x2b4   : > { %v1148_v44 = vpop.f32.mrb[15].mxu1  ;;  %v789_v46 = vsel %vm390_vm2, %v784_v45, -inf }
 0x2c3   : > { %447 = vrot.lane.b32.xlu0 %v1678_v9, %s1441_s27  ;;  %s1752_s27 = scalar_lea.hbm %s1803_s6, %s1071_s15 }
 0x2c7   : > { %799 = vrot.lane.b32.xlu0 %v1678_v9, %s1442_s29  ;;  %s1354_s29 = scalar_lea.vmem %s1754_s30, 128 }
 0x2c8   : > { %p1355_p0 = scmp.ne.s32.totalorder %s1754_s30, %s1354_s29 }
 0x2ca   : > { %p1356_p3 = pnand %p1355_p0, %p1817_p1 }
 0x2cc   : > { %p1357_p7 = pneg %p1356_p3 }
 0x2d2   : > { %790 = vmax.xlane.f32.xlu1 %v789_v46 }
 0x2e3   : > { %680 = vrot.lane.b32.xlu1 %v1678_v9, %s1443_s14  ;;  %s1447_s14 = smov [#allocation9]  }
 0x32a   : > { %v439_v47 = vpop.xlane.xlu1 %438 }
 0x32b   : > { %v440_v48 = vsub.f32 %v432_v24, %v439_v47 }
 0x32d   : > { %v441_v49 = vmul.f32 1.442695, %v440_v48 }
 0x32e   : > { %v562_v59 = vpop.permute.xlu1 %561 }
 0x32f   : > { %1252 = vpow2.f32 %v441_v49  ;;  %v567_v63 = vsel %vm452_vm3, %v562_v59, 0 }
 0x332   : > { %v553_v50 = vpop.xlane.xlu0 %552 }
 0x333   : > { %v554_v51 = vsub.f32 %v546_v30, %v553_v50 }
 0x335   : > { %v555_v52 = vmul.f32 1.442695, %v554_v51 }
 0x337   : > { %1254 = vpow2.f32 %v555_v52 }
 0x339   : > { %v1253_v56 = vpop.eup %1252 }
 0x33a   : > { %v672_v53 = vpop.xlane.xlu0 %671  ;;  %v446_v61 = vpack.c.bf16 %v1253_v56, %v1253_v56  ;;  %v443_v1 = vsel %vm390_vm2, %v1253_v56, 0.0 }
 0x33b   : > { %v673_v54 = vsub.f32 %v665_v36, %v672_v53  ;;  %v1250_v36 = vld [vmem:[#allocation8] sm:$0xff]  }
 0x33c   : > { %1156 = vmatpush3.bf16.msra.mxu1 %v1250_v36  ;;  %v1066_v53 = vld [vmem:[%s1802_s5] ss:$0 sm:$0xff] }
 0x33d   : > { %v674_v55 = vmul.f32 1.442695, %v673_v54  ;;  %1157 = vmatprep.subr.bf16.mxu1 %v1431_v0 }
 0x33e   : > { %v448_v57 = vpop.permute.xlu0 %447 }
 0x33f   : > { %1256 = vpow2.f32 %v674_v55  ;;  %v454_v58 = vsel %vm452_vm3, %v448_v57, 0 }
 0x340   : > { %1114 = vmatpush3.bf16.msra.mxu0 %v454_v58  ;;  %1158 = vmatpush3.bf16.msra.mxu1 %v1251_v40 }
 0x341   : > { %v1255_v60 = vpop.eup %1254  ;;  %1125 = vmatprep.subr.bf16.mxu0 %v1431_v0 }
 0x342   : > { %v557_v62 = vsel %vm390_vm2, %v1255_v60, 0.0  ;;  %v560_v3 = vpack.c.bf16 %v1255_v60, %v1255_v60  ;;  %v800_v10 = vpop.permute.xlu0 %799 }
 0x343   : > { %558 = vadd.xlane.f32.xlu1 %v557_v62  ;;  %1116 = vmatmul.mubr.msk.bf16.vlgmr.msra.gmra.mrb[4].mxu0 %vm390_vm2, %v446_v61  ;;  %v805_v12 = vsel %vm452_vm3, %v800_v10, 0 }
 0x344   : > { %1126 = vmatpush3.bf16.msra.mxu0 %v567_v63  ;;  %1127 = vmatprep.mubr.msk.bf16.mxu0 %vm1432_vm0, %v1431_v0 }
 0x345   : > { %1137 = vmatprep.subr.bf16.mxu0 %v1431_v0 }
 0x347   : > { %444 = vadd.xlane.f32.xlu1 %v443_v1 }
 0x349   : > { %v1257_v2 = vpop.eup %1256 }
 0x34a   : > { %v676_v4 = vsel %vm390_vm2, %v1257_v2, 0.0  ;;  %v679_v11 = vpack.c.bf16 %v1257_v2, %v1257_v2 }
 0x34b   : > { %677 = vadd.xlane.f32.xlu0 %v676_v4  ;;  %1128 = vmatmul.mubr.msk.bf16.vlgmr.msra.gmra.mrb[8].mxu0 %vm390_vm2, %v560_v3 }
 0x34c   : > { %1139 = vmatprep.mubr.msk.bf16.mxu0 %vm1432_vm0, %v1431_v0 }
 0x35f   : > { %v791_v5 = vpop.xlane.xlu1 %790 }
 0x360   : > { %v792_v6 = vsub.f32 %v784_v45, %v791_v5 }
 0x362   : > { %v793_v7 = vmul.f32 1.442695, %v792_v6 }
 0x363   : > { %v681_v8 = vpop.permute.xlu1 %680 }
 0x364   : > { %1258 = vpow2.f32 %v793_v7  ;;  %v686_v9 = vsel %vm452_vm3, %v681_v8, 0 }
 0x365   : > { %1138 = vmatpush3.bf16.msra.mxu0 %v686_v9 }
 0x366   : > { %1149 = vmatprep.subr.bf16.mxu0 %v1431_v0 }
 0x368   : > { %1140 = vmatmul.mubr.msk.bf16.vlgmr.msra.gmra.mrb[12].mxu0 %vm390_vm2, %v679_v11 }
 0x369   : > { %1150 = vmatpush3.bf16.msra.mxu0 %v805_v12  ;;  %1151 = vmatprep.mubr.msk.bf16.mxu0 %vm1432_vm0, %v1431_v0 }
 0x36e   : > { %v1259_v13 = vpop.eup %1258 }
 0x36f   : > { %v795_v14 = vsel %vm390_vm2, %v1259_v13, 0.0  ;;  %v798_v15 = vpack.c.bf16 %v1259_v13, %v1259_v13 }
 0x370   : > { %796 = vadd.xlane.f32.xlu0 %v795_v14 }
 0x371   : > { %1152 = vmatmul.mubr.msk.bf16.vlgmr.msra.gmra.mrb[16].mxu0 %vm390_vm2, %v798_v15 }
 0x3d0   : > { %v559_v16 = vpop.xlane.xlu1 %558 }
 0x3d4   : > { %v445_v17 = vpop.xlane.xlu1 %444 }
 0x3d5   : > { %1260 = vrcp.f32 %v445_v17 }
 0x3d6   : > { %1262 = vrcp.f32 %v559_v16 }
 0x3d8   : > { %v678_v32 = vpop.xlane.xlu0 %677 }
 0x3d9   : > { %1264 = vrcp.f32 %v678_v32 }
 0x3df   : > { %v1261_v18 = vpop.eup %1260 }
 0x3e0   : > { %v1263_v25 = vpop.eup %1262 }
 0x3e3   : > { %v1265_v34 = vpop.eup %1264 }
 0x3fd   : > { %v797_v33 = vpop.xlane.xlu0 %796 }
 0x3fe   : > { %1266 = vrcp.f32 %v797_v33 }
 0x408   : > { %v1267_v43 = vpop.eup %1266 }
 0x416   : > { %v490_v19 = vpop.f32.mrb[4].mxu0 }
 0x417   : > { %v497_v20 = vmul.f32 %v1261_v18, %v490_v19  ;;  %v1117_v21 = vpop.f32.mrb[5].mxu0 }
 0x418   : > { %v493_v22 = vpop.f32.mrb[6].mxu0 }
 0x419   : > { %v498_v23 = vpack.c.bf16 %v497_v20, %v497_v20  ;;  %v1118_v24 = vpop.f32.mrb[7].mxu0 }
 0x41b   : > { %500 = vst.msk [vmem:[#allocation2] sm:$0xf] %vm499_vm4, %v498_v23 }
 0x41e   : > { %v603_v26 = vpop.f32.mrb[8].mxu0 }
 0x41f   : > { %v610_v27 = vmul.f32 %v1263_v25, %v603_v26  ;;  %v1129_v28 = vpop.f32.mrb[9].mxu0 }
 0x420   : > { %v606_v29 = vpop.f32.mrb[10].mxu0 }
 0x421   : > { %v1074_v30 = vpack.c.bf16 %v610_v27, %v610_v27  ;;  %v1130_v31 = vpop.f32.mrb[11].mxu0 }
 0x423   : > { %615 = vrot.lane.b32.xlu0 %v1074_v30, %s1444_s16  ;;  %s1358_s16 = sshll.u32 %s1447_s14, 4  ;;  %s1359_s16 = int_to_ptr.vmem [resolvable:$false] %s1358_s16 }
 0x424   : > { %p1361_p9 = scmp.lt.s32.totalorder %s1754_s30, %s1359_s16 }
 0x43b   : > { %v722_v35 = vpop.f32.mrb[12].mxu0 }
 0x43c   : > { %v729_v37 = vmul.f32 %v1265_v34, %v722_v35  ;;  %v1141_v38 = vpop.f32.mrb[13].mxu0 }
 0x43d   : > { %v725_v39 = vpop.f32.mrb[14].mxu0 }
 0x43e   : > { %v1075_v41 = vpack.c.bf16 %v729_v37, %v729_v37  ;;  %v1142_v42 = vpop.f32.mrb[15].mxu0 }
 0x440   : > { %734 = vrot.lane.b32.xlu1 %v1075_v41, %s1445_s7  ;;  %s1360_s7 = scalar_lea.vmem %s1359_s16, 256 }
 0x441   : > { %p1362_p12 = scmp.lt.s32.totalorder %s1360_s7, %s1354_s29 }
 0x443   : > { %p1363_p2 = por %p1362_p12, %p1361_p9 }
 0x444   : > { %v841_v44 = vpop.f32.mrb[16].mxu0 }
 0x445   : > { %v848_v45 = vmul.f32 %v1267_v43, %v841_v44  ;;  %v1153_v46 = vpop.f32.mrb[17].mxu0  ;;  %p1364_p13 = pnand %p1363_p2, %p1357_p7 }
 0x446   : > { %v844_v47 = vpop.f32.mrb[18].mxu0 }
 0x447   : > { %v1076_v48 = vpack.c.bf16 %v848_v45, %v848_v45  ;;  %v1154_v49 = vpop.f32.mrb[19].mxu0 }
 0x449   : > { %853 = vrot.lane.b32.xlu1 %v1076_v48, %s1446_s17 }
 0x495   : > { %v616_v50 = vpop.permute.xlu0 %615 }
 0x496   : > { %619 = vst.msk [vmem:[#allocation2] sm:$0xf] %vm618_vm5, %v616_v50 }
 0x4b2   : > { %v735_v51 = vpop.permute.xlu1 %734 }
 0x4b3   : > { %738 = vst.msk [vmem:[#allocation2] sm:$0xf] %vm737_vm6, %v735_v51 }
 0x4bb   : > { %v854_v0 = vpop.permute.xlu1 %853 }
 0x4bc   : > { %857 = vst.msk [vmem:[#allocation2] sm:$0xf] %vm856_vm7, %v854_v0 }
 0x4c3   : > { %v858_v52 = vld [vmem:[#allocation2] sm:$0xf] }
 0x4c4   : > { %1160 = vmatmul.mubr.msk.bf16.vlgmr.msra.gmra.mrb[16].mxu1 %vm336_vm1, %v858_v52 }
 0x597   : > { %v919_v54 = vpop.f32.mrb[16].mxu1 }
 0x598   : > { %v920_v55 = vadd.f32 %v1066_v53, %v919_v54  ;;  %v1161_v56 = vpop.f32.mrb[17].mxu1 }
 0x599   : > { %v922_v57 = vpop.f32.mrb[18].mxu1 }
 0x59a   : > { %v1162_v58 = vpop.f32.mrb[19].mxu1  ;;  %925 = vst.msk [vmem:[%s306_s8] sm:$0xff] %vm336_vm1, %v920_v55 }
 0x59b   : > { %1367 = shalt.err (!%p1364_p13)
}
 0x59c   : > { %s1368_s18 = scalar_lea.hbm %s1752_s27, 128  ;;  %s1372_s12 = scalar_lea.hbm %s1803_s6, 256 }
 0x59d   : > { %p1369_p6 = scmp.ne.s32.totalorder %s1752_s27, %s1368_s18  ;;  %p1373_p5 = scmp.lt.u32.totalorder %s1752_s27, %s1803_s6 }
 0x59e   : > { %p1374_p11 = scmp.lt.u32.totalorder %s1372_s12, %s1368_s18  ;;  %p1376_p0 = scmp.lt.u32.totalorder %s1368_s18, %s1752_s27 }
 0x59f   : > { %p1370_p10 = pnand %p1369_p6, %p1817_p1 }
 0x5a0   : > { %p1375_p8 = por %p1374_p11, %p1373_p5 }
 0x5a1   : > { %p1371_p4 = pneg %p1370_p10 }
 0x5a2   : > { %p1377_p3 = por %p1376_p0, %p1375_p8 }
 0x5a4   : > { %p1378_p7 = pnand %p1377_p3, %p1371_p4 }
 0x5a6   : > { %1381 = shalt.err (!%p1378_p7)
}
 0x5a7   : > { %1173 = dma.vmem_to_hbm [thread:$0]  (%p1817_p1), %s1754_s30, 128, %s1752_s27, %s927_s25  }
 0x5a8 PF: > { %s952_s8 = sand.u32 1, %s1412_s21   ;;  %p1818_p9 = scmp.ne.s32.totalorder %s1808_s28, 0 }
 0x5a9   : > { %p1819_p12 = scmp.ge.s32.totalorder %s1424_s24, 2  ;;  %s953_s13 = scalar_lea.sflag [#allocation5], %s952_s8 }
 0x5ab   : > { %p1187_p2 = pnand %p1819_p12, %p1818_p9 }
 0x5ad   : > { %1407 = dma.done.wait (!%p1187_p2), %s953_s13, 128  }
 0x5ae   : > { %1409 = vsyncadd (!%p1187_p2), %s953_s13, 4294967168  ;;  %p20_p13 = scmp.ge.s32.totalorder %s1593_s26, 4   ;;  %s1820_s21 = smov %s1416_s22 }
 0x5af   : > { %s1821_s22 = smov %s1420_s23  ;;  %s1822_s23 = smov %s1609_s11 }
 0x5b0   : > { %s1823_s24 = smov %s1593_s26  ;;  %22 = sbr.rel (!%p20_p13) target bundleno = 6 (0x6), region = 100 }
 0x5b7   :  { %958 = vsyncpa [#allocation4], 1 }
 0x5b8   :  { %960 = vsyncpa [#allocation4 + $0x1], 1 }
 0x5b9   :  { %961 = vsyncpa [#allocation7], 1 }
 0x5ba   :  { %962 = vsyncpa [#allocation5], 1 }
 0x5bb   :  { %964 = vsyncpa [#allocation5 + $0x1], 1 }

</bundles_post_ra>
